<compile_context>
chip_gen: v7x
topology: tpu7x:2x2x1
jax: 0.10.0
libtpu: 0.0.40
codegen_flags: <defaults>
</compile_context>

<pallas_src>
import jax
import jax.numpy as jnp
from jax.experimental import pallas as pl
from jax.experimental.pallas import tpu as pltpu

# Small, TPU-friendly shapes consistent with the module's structure
# (original module: cross_dim=768, clip_dim=1024, tokens=4).
CROSS_DIM = 128          # cross_attention_dim
CLIP_DIM = 256           # clip_embeddings_dim
TOKENS = 4               # clip_extra_context_tokens
EPS = 1e-5               # torch.nn.LayerNorm default eps


def _round_up(x, m):
    return (x + m - 1) // m * m


def image_proj_kernel(x_ref, w_ref, b_ref, g_ref, beta_ref, o_ref):
    # x_ref:    (tm, CLIP_DIM)               bf16
    # w_ref:    (CLIP_DIM, TOKENS*CROSS_DIM) bf16
    # b_ref:    (1, TOKENS*CROSS_DIM)        f32
    # g_ref:    (1, CROSS_DIM)               f32
    # beta_ref: (1, CROSS_DIM)               f32
    # o_ref:    (tm, TOKENS*CROSS_DIM)       lane-dense 2-D output
    y = jnp.dot(x_ref[...], w_ref[...], preferred_element_type=jnp.float32)
    y = y + b_ref[...]                    # (tm, TOKENS*CROSS_DIM), f32
    g = g_ref[...]                        # (1, CROSS_DIM), f32  (hoisted out of loop)
    bt = beta_ref[...]                    # (1, CROSS_DIM), f32

    # Per-token LayerNorm on static, 128-lane-aligned slices (no in-kernel relayout).
    for t in range(TOKENS):
        lo, hi = t * CROSS_DIM, (t + 1) * CROSS_DIM
        yt = y[:, lo:hi]                                  # (tm, CROSS_DIM)
        mean = jnp.mean(yt, axis=-1, keepdims=True)       # XLU reduce
        c = yt - mean
        var = jnp.mean(c * c, axis=-1, keepdims=True)
        normed = c * jax.lax.rsqrt(var + EPS)             # EUP rsqrt
        o_ref[:, lo:hi] = (normed * g + bt).astype(o_ref.dtype)


def image_proj_model(image_embeds, w, b, gamma, beta, *, tm=None):
    """image_embeds: (B, CLIP_DIM) -> (B, TOKENS, CROSS_DIM)."""
    B, K = image_embeds.shape
    N = w.shape[1]
    assert K == CLIP_DIM and N == TOKENS * CROSS_DIM
    out_dtype = image_embeds.dtype

    # MXU-friendly batch tile: multiple of 8 sublanes, capped at 128 rows.
    if tm is None:
        tm = min(128, _round_up(B, 8))
    Bp = _round_up(B, tm)

    x = image_embeds
    if Bp != B:
        x = jnp.pad(x, ((0, Bp - B), (0, 0)))
    # bf16 matmul operands; f32 accumulation happens inside the kernel.
    x = x.astype(jnp.bfloat16)
    wq = w.astype(jnp.bfloat16)
    # Small constants stored as f32 so the kernel does no per-step casts.
    b2 = b.reshape(1, N).astype(jnp.float32)
    g2 = gamma.reshape(1, CROSS_DIM).astype(jnp.float32)
    beta2 = beta.reshape(1, CROSS_DIM).astype(jnp.float32)

    out2d = pl.pallas_call(
        image_proj_kernel,
        out_shape=jax.ShapeDtypeStruct((Bp, N), out_dtype),
        grid_spec=pltpu.PrefetchScalarGridSpec(
            num_scalar_prefetch=0,
            grid=(Bp // tm,),
            in_specs=[
                # x tile: pipelined over the batch grid.
                pl.BlockSpec((tm, K), lambda i: (i, 0)),
                # Constant-index blocks: fetched once, resident across the grid.
                pl.BlockSpec((K, N), lambda i: (0, 0)),
                pl.BlockSpec((1, N), lambda i: (0, 0)),
                pl.BlockSpec((1, CROSS_DIM), lambda i: (0, 0)),
                pl.BlockSpec((1, CROSS_DIM), lambda i: (0, 0)),
            ],
            # Lane-dense 2-D output (tm, TOKENS*CROSS_DIM) -> unmasked full-width stores.
            out_specs=pl.BlockSpec((tm, N), lambda i: (i, 0)),
        ),
        compiler_params=pltpu.CompilerParams(
            dimension_semantics=("parallel",),
            # NOTE: at the original dims (1024 -> 4*768) add an N grid axis in
            # CROSS_DIM multiples and/or raise vmem_limit_bytes for v7x's 64 MiB VMEM.
        ),
    )(x, wq, b2, g2, beta2)

    # Drop batch padding and split tokens out — free metadata ops in the wrapper.
    return out2d[:B].reshape(B, TOKENS, CROSS_DIM)


def reference(image_embeds, w, b, gamma, beta):
    # Mirror the kernel's precision: bf16 matmul operands, f32 accumulation + LayerNorm.
    x = image_embeds.astype(jnp.bfloat16).astype(jnp.float32)
    wf = w.astype(jnp.bfloat16).astype(jnp.float32)
    y = jnp.dot(x, wf, precision=jax.lax.Precision.HIGHEST) + b.astype(jnp.float32)
    y = y.reshape(-1, TOKENS, CROSS_DIM)
    mean = jnp.mean(y, axis=-1, keepdims=True)
    var = jnp.mean((y - mean) ** 2, axis=-1, keepdims=True)
    y = (y - mean) * jax.lax.rsqrt(var + EPS)
    return (y * gamma + beta).astype(image_embeds.dtype)


if __name__ == "__main__":
    key = jax.random.PRNGKey(0)
    k_x, k_w, k_b = jax.random.split(key, 3)

    B = 2
    x = jax.random.normal(k_x, (B, CLIP_DIM), dtype=jnp.float32)

    # Deterministic parameter init (nn.Linear-style uniform, LayerNorm affine = ones/zeros).
    N = TOKENS * CROSS_DIM
    bound = 1.0 / (CLIP_DIM ** 0.5)
    w = jax.random.uniform(k_w, (CLIP_DIM, N), minval=-bound, maxval=bound, dtype=jnp.float32)
    b = jax.random.uniform(k_b, (N,), minval=-bound, maxval=bound, dtype=jnp.float32)
    gamma = jnp.ones((CROSS_DIM,), dtype=jnp.float32)
    beta = jnp.zeros((CROSS_DIM,), dtype=jnp.float32)

    out = image_proj_model(x, w, b, gamma, beta)
    out = jax.block_until_ready(out)

    ref = reference(x, w, b, gamma, beta)
    assert out.shape == (B, TOKENS, CROSS_DIM)
    err = float(jnp.max(jnp.abs(out - ref)))
    assert jnp.allclose(out, ref, atol=2e-3, rtol=2e-3), err

    print("KERNEL_OK")
</pallas_src>

<mosaic_0001>
module attributes {stable_mosaic.version = 11 : i64} {
  func.func @image_proj_kernel(%arg0: i32, %arg1: memref<8x256xbf16, #tpu.memory_space<vmem>>, %arg2: memref<256x512xbf16, #tpu.memory_space<vmem>>, %arg3: memref<1x512xf32, #tpu.memory_space<vmem>>, %arg4: memref<1x128xf32, #tpu.memory_space<vmem>>, %arg5: memref<1x128xf32, #tpu.memory_space<vmem>>, %arg6: memref<8x512xf32, #tpu.memory_space<vmem>>) attributes {dimension_semantics = [#tpu.dimension_semantics<parallel>], iteration_bounds = array<i64: 1>, scalar_prefetch = 0 : i64, scratch_operands = 0 : i64, tpu.core_type = #tpu.core_type<tc>, window_params = [{transform_indices = @transform_0, window_bounds = array<i64: 8, 256>}, {pipeline_mode = #tpu.pipeline_mode<synchronous>, transform_indices = @transform_1, window_bounds = array<i64: 256, 512>}, {pipeline_mode = #tpu.pipeline_mode<synchronous>, transform_indices = @transform_2, window_bounds = array<i64: 1, 512>}, {pipeline_mode = #tpu.pipeline_mode<synchronous>, transform_indices = @transform_3, window_bounds = array<i64: 1, 128>}, {pipeline_mode = #tpu.pipeline_mode<synchronous>, transform_indices = @transform_4, window_bounds = array<i64: 1, 128>}, {transform_indices = @transform_5, window_bounds = array<i64: 8, 512>}]} {
    %c0 = arith.constant 0 : index
    %c0_0 = arith.constant 0 : index
    %0 = vector.load %arg1[%c0, %c0_0] : memref<8x256xbf16, #tpu.memory_space<vmem>>, vector<8x256xbf16>
    %c0_1 = arith.constant 0 : index
    %c0_2 = arith.constant 0 : index
    %1 = vector.load %arg2[%c0_1, %c0_2] : memref<256x512xbf16, #tpu.memory_space<vmem>>, vector<256x512xbf16>
    %cst = arith.constant dense<0.000000e+00> : vector<8x512xf32>
    %2 = tpu.matmul %0, %1, %cst {dimension_numbers = #tpu.dot_dimension_numbers<[1], [0], [0], [1], [0, 0, 1, 1], [], []>} : vector<8x256xbf16>, vector<256x512xbf16>, vector<8x512xf32> -> vector<8x512xf32>
    %c0_3 = arith.constant 0 : index
    %c0_4 = arith.constant 0 : index
    %3 = vector.load %arg3[%c0_3, %c0_4] : memref<1x512xf32, #tpu.memory_space<vmem>>, vector<1x512xf32>
    %4 = vector.broadcast %3 : vector<1x512xf32> to vector<8x512xf32>
    %5 = arith.addf %2, %4 : vector<8x512xf32>
    %c0_5 = arith.constant 0 : index
    %c0_6 = arith.constant 0 : index
    %6 = vector.load %arg4[%c0_5, %c0_6] : memref<1x128xf32, #tpu.memory_space<vmem>>, vector<1x128xf32>
    %c0_7 = arith.constant 0 : index
    %c0_8 = arith.constant 0 : index
    %7 = vector.load %arg5[%c0_7, %c0_8] : memref<1x128xf32, #tpu.memory_space<vmem>>, vector<1x128xf32>
    %8 = vector.extract_strided_slice %5 {offsets = [0, 0], sizes = [8, 128], strides = [1, 1]} : vector<8x512xf32> to vector<8x128xf32>
    %cst_9 = arith.constant dense<0.000000e+00> : vector<8xf32>
    %9 = vector.multi_reduction <add>, %8, %cst_9 [1] : vector<8x128xf32> to vector<8xf32>
    %10 = vector.shape_cast %9 : vector<8xf32> to vector<8x1xf32>
    %cst_10 = arith.constant 1.280000e+02 : f32
    %11 = vector.broadcast %cst_10 : f32 to vector<8x1xf32>
    %12 = arith.divf %10, %11 : vector<8x1xf32>
    %13 = vector.broadcast %12 : vector<8x1xf32> to vector<8x128xf32>
    %14 = arith.subf %8, %13 : vector<8x128xf32>
    %15 = arith.mulf %14, %14 : vector<8x128xf32>
    %cst_11 = arith.constant dense<0.000000e+00> : vector<8xf32>
    %16 = vector.multi_reduction <add>, %15, %cst_11 [1] : vector<8x128xf32> to vector<8xf32>
    %17 = vector.shape_cast %16 : vector<8xf32> to vector<8x1xf32>
    %cst_12 = arith.constant 1.280000e+02 : f32
    %18 = vector.broadcast %cst_12 : f32 to vector<8x1xf32>
    %19 = arith.divf %17, %18 : vector<8x1xf32>
    %cst_13 = arith.constant 9.99999974E-6 : f32
    %20 = vector.broadcast %cst_13 : f32 to vector<8x1xf32>
    %21 = arith.addf %19, %20 : vector<8x1xf32>
    %22 = math.rsqrt %21 : vector<8x1xf32>
    %23 = vector.broadcast %22 : vector<8x1xf32> to vector<8x128xf32>
    %24 = arith.mulf %14, %23 : vector<8x128xf32>
    %25 = vector.broadcast %6 : vector<1x128xf32> to vector<8x128xf32>
    %26 = arith.mulf %24, %25 : vector<8x128xf32>
    %27 = vector.broadcast %7 : vector<1x128xf32> to vector<8x128xf32>
    %28 = arith.addf %26, %27 : vector<8x128xf32>
    %c0_14 = arith.constant 0 : index
    %c0_15 = arith.constant 0 : index
    %29 = vector.load %arg6[%c0_14, %c0_15] : memref<8x512xf32, #tpu.memory_space<vmem>>, vector<8x128xf32>
    tpu.vector_store %arg6[%c0_14, %c0_15], %28 {strides = array<i32>} : memref<8x512xf32, #tpu.memory_space<vmem>>, vector<8x128xf32>,
    %30 = vector.extract_strided_slice %5 {offsets = [0, 128], sizes = [8, 128], strides = [1, 1]} : vector<8x512xf32> to vector<8x128xf32>
    %cst_16 = arith.constant dense<0.000000e+00> : vector<8xf32>
    %31 = vector.multi_reduction <add>, %30, %cst_16 [1] : vector<8x128xf32> to vector<8xf32>
    %32 = vector.shape_cast %31 : vector<8xf32> to vector<8x1xf32>
    %cst_17 = arith.constant 1.280000e+02 : f32
    %33 = vector.broadcast %cst_17 : f32 to vector<8x1xf32>
    %34 = arith.divf %32, %33 : vector<8x1xf32>
    %35 = vector.broadcast %34 : vector<8x1xf32> to vector<8x128xf32>
    %36 = arith.subf %30, %35 : vector<8x128xf32>
    %37 = arith.mulf %36, %36 : vector<8x128xf32>
    %cst_18 = arith.constant dense<0.000000e+00> : vector<8xf32>
    %38 = vector.multi_reduction <add>, %37, %cst_18 [1] : vector<8x128xf32> to vector<8xf32>
    %39 = vector.shape_cast %38 : vector<8xf32> to vector<8x1xf32>
    %cst_19 = arith.constant 1.280000e+02 : f32
    %40 = vector.broadcast %cst_19 : f32 to vector<8x1xf32>
    %41 = arith.divf %39, %40 : vector<8x1xf32>
    %cst_20 = arith.constant 9.99999974E-6 : f32
    %42 = vector.broadcast %cst_20 : f32 to vector<8x1xf32>
    %43 = arith.addf %41, %42 : vector<8x1xf32>
    %44 = math.rsqrt %43 : vector<8x1xf32>
    %45 = vector.broadcast %44 : vector<8x1xf32> to vector<8x128xf32>
    %46 = arith.mulf %36, %45 : vector<8x128xf32>
    %47 = vector.broadcast %6 : vector<1x128xf32> to vector<8x128xf32>
    %48 = arith.mulf %46, %47 : vector<8x128xf32>
    %49 = vector.broadcast %7 : vector<1x128xf32> to vector<8x128xf32>
    %50 = arith.addf %48, %49 : vector<8x128xf32>
    %c0_21 = arith.constant 0 : index
    %c128 = arith.constant 128 : index
    %51 = vector.load %arg6[%c0_21, %c128] : memref<8x512xf32, #tpu.memory_space<vmem>>, vector<8x128xf32>
    tpu.vector_store %arg6[%c0_21, %c128], %50 {strides = array<i32>} : memref<8x512xf32, #tpu.memory_space<vmem>>, vector<8x128xf32>,
    %52 = vector.extract_strided_slice %5 {offsets = [0, 256], sizes = [8, 128], strides = [1, 1]} : vector<8x512xf32> to vector<8x128xf32>
    %cst_22 = arith.constant dense<0.000000e+00> : vector<8xf32>
    %53 = vector.multi_reduction <add>, %52, %cst_22 [1] : vector<8x128xf32> to vector<8xf32>
    %54 = vector.shape_cast %53 : vector<8xf32> to vector<8x1xf32>
    %cst_23 = arith.constant 1.280000e+02 : f32
    %55 = vector.broadcast %cst_23 : f32 to vector<8x1xf32>
    %56 = arith.divf %54, %55 : vector<8x1xf32>
    %57 = vector.broadcast %56 : vector<8x1xf32> to vector<8x128xf32>
    %58 = arith.subf %52, %57 : vector<8x128xf32>
    %59 = arith.mulf %58, %58 : vector<8x128xf32>
    %cst_24 = arith.constant dense<0.000000e+00> : vector<8xf32>
    %60 = vector.multi_reduction <add>, %59, %cst_24 [1] : vector<8x128xf32> to vector<8xf32>
    %61 = vector.shape_cast %60 : vector<8xf32> to vector<8x1xf32>
    %cst_25 = arith.constant 1.280000e+02 : f32
    %62 = vector.broadcast %cst_25 : f32 to vector<8x1xf32>
    %63 = arith.divf %61, %62 : vector<8x1xf32>
    %cst_26 = arith.constant 9.99999974E-6 : f32
    %64 = vector.broadcast %cst_26 : f32 to vector<8x1xf32>
    %65 = arith.addf %63, %64 : vector<8x1xf32>
    %66 = math.rsqrt %65 : vector<8x1xf32>
    %67 = vector.broadcast %66 : vector<8x1xf32> to vector<8x128xf32>
    %68 = arith.mulf %58, %67 : vector<8x128xf32>
    %69 = vector.broadcast %6 : vector<1x128xf32> to vector<8x128xf32>
    %70 = arith.mulf %68, %69 : vector<8x128xf32>
    %71 = vector.broadcast %7 : vector<1x128xf32> to vector<8x128xf32>
    %72 = arith.addf %70, %71 : vector<8x128xf32>
    %c0_27 = arith.constant 0 : index
    %c256 = arith.constant 256 : index
    %73 = vector.load %arg6[%c0_27, %c256] : memref<8x512xf32, #tpu.memory_space<vmem>>, vector<8x128xf32>
    tpu.vector_store %arg6[%c0_27, %c256], %72 {strides = array<i32>} : memref<8x512xf32, #tpu.memory_space<vmem>>, vector<8x128xf32>,
    %74 = vector.extract_strided_slice %5 {offsets = [0, 384], sizes = [8, 128], strides = [1, 1]} : vector<8x512xf32> to vector<8x128xf32>
    %cst_28 = arith.constant dense<0.000000e+00> : vector<8xf32>
    %75 = vector.multi_reduction <add>, %74, %cst_28 [1] : vector<8x128xf32> to vector<8xf32>
    %76 = vector.shape_cast %75 : vector<8xf32> to vector<8x1xf32>
    %cst_29 = arith.constant 1.280000e+02 : f32
    %77 = vector.broadcast %cst_29 : f32 to vector<8x1xf32>
    %78 = arith.divf %76, %77 : vector<8x1xf32>
    %79 = vector.broadcast %78 : vector<8x1xf32> to vector<8x128xf32>
    %80 = arith.subf %74, %79 : vector<8x128xf32>
    %81 = arith.mulf %80, %80 : vector<8x128xf32>
    %cst_30 = arith.constant dense<0.000000e+00> : vector<8xf32>
    %82 = vector.multi_reduction <add>, %81, %cst_30 [1] : vector<8x128xf32> to vector<8xf32>
    %83 = vector.shape_cast %82 : vector<8xf32> to vector<8x1xf32>
    %cst_31 = arith.constant 1.280000e+02 : f32
    %84 = vector.broadcast %cst_31 : f32 to vector<8x1xf32>
    %85 = arith.divf %83, %84 : vector<8x1xf32>
    %cst_32 = arith.constant 9.99999974E-6 : f32
    %86 = vector.broadcast %cst_32 : f32 to vector<8x1xf32>
    %87 = arith.addf %85, %86 : vector<8x1xf32>
    %88 = math.rsqrt %87 : vector<8x1xf32>
    %89 = vector.broadcast %88 : vector<8x1xf32> to vector<8x128xf32>
    %90 = arith.mulf %80, %89 : vector<8x128xf32>
    %91 = vector.broadcast %6 : vector<1x128xf32> to vector<8x128xf32>
    %92 = arith.mulf %90, %91 : vector<8x128xf32>
    %93 = vector.broadcast %7 : vector<1x128xf32> to vector<8x128xf32>
    %94 = arith.addf %92, %93 : vector<8x128xf32>
    %c0_33 = arith.constant 0 : index
    %c384 = arith.constant 384 : index
    %95 = vector.load %arg6[%c0_33, %c384] : memref<8x512xf32, #tpu.memory_space<vmem>>, vector<8x128xf32>
    tpu.vector_store %arg6[%c0_33, %c384], %94 {strides = array<i32>} : memref<8x512xf32, #tpu.memory_space<vmem>>, vector<8x128xf32>,
    return
  }
  func.func @transform_0(%arg0: i32) -> (i32, i32) {
    %c0_i32 = arith.constant 0 : i32
    %c0_i32_0 = arith.constant 0 : i32
    return %arg0, %c0_i32 : i32, i32
  }
  func.func @transform_1(%arg0: i32) -> (i32, i32) {
    %c0_i32 = arith.constant 0 : i32
    %c0_i32_0 = arith.constant 0 : i32
    %c0_i32_1 = arith.constant 0 : i32
    return %c0_i32, %c0_i32_0 : i32, i32
  }
  func.func @transform_2(%arg0: i32) -> (i32, i32) {
    %c0_i32 = arith.constant 0 : i32
    %c0_i32_0 = arith.constant 0 : i32
    %c0_i32_1 = arith.constant 0 : i32
    return %c0_i32, %c0_i32_0 : i32, i32
  }
  func.func @transform_3(%arg0: i32) -> (i32, i32) {
    %c0_i32 = arith.constant 0 : i32
    %c0_i32_0 = arith.constant 0 : i32
    %c0_i32_1 = arith.constant 0 : i32
    return %c0_i32, %c0_i32_0 : i32, i32
  }
  func.func @transform_4(%arg0: i32) -> (i32, i32) {
    %c0_i32 = arith.constant 0 : i32
    %c0_i32_0 = arith.constant 0 : i32
    %c0_i32_1 = arith.constant 0 : i32
    return %c0_i32, %c0_i32_0 : i32, i32
  }
  func.func @transform_5(%arg0: i32) -> (i32, i32) {
    %c0_i32 = arith.constant 0 : i32
    %c0_i32_0 = arith.constant 0 : i32
    return %arg0, %c0_i32 : i32, i32
  }
}

</mosaic_0001>

<bundles_post_ra>
// kernel: tpu_custom_call.1
= control target key start
LH: loop header
LB: loop body
LE: loop exit
PB: predicated region body
PF: predicated region fallthrough
CT: control target
= control target key end

     0   :  { %10 = vsyncpa [#allocation3], 0  ;;  %s968_s0 = inlined_call_operand.hbm [shape: bf16[8,256], index: 0, kind: input, shape index: {}]   ;;  %s969_s1 = inlined_call_operand.hbm [shape: bf16[256,512], index: 1, kind: input, shape index: {}]   ;;  %s970_s2 = inlined_call_operand.vmem [shape: f32[1,512], index: 2, kind: input, shape index: {}]   ;;  %s971_s3 = inlined_call_operand.vmem [shape: f32[1,128], index: 3, kind: input, shape index: {}]   ;;  %s972_s4 = inlined_call_operand.vmem [shape: f32[1,128], index: 4, kind: input, shape index: {}]   ;;  %s973_s5 = inlined_call_operand.hbm [shape: f32[8,512], index: 5, kind: output, shape index: {}]  }
   0x1   :  { %11 = vsyncpa [#allocation6], 0 }
   0x2   :  { %12 = vsyncpa [#allocation4], 0  ;;  %s881_s18 = smov [#allocation2]   ;;  %s882_s20 = smov [#allocation5]  }
   0x3   :  { %s19_s19 = sshll.u32 %s881_s18, 4  ;;  %s28_s21 = sshll.u32 %s882_s20, 4  ;;  %s20_s19 = int_to_ptr.vmem [resolvable:$true] %s19_s19  ;;  %s916_s21 = int_to_ptr.vmem [resolvable:$true] %s28_s21 }
   0x4   :  { %s809_s24 = scalar_lea.hbm %s968_s0, 128 }
   0x5   :  { %p810_p0 = scmp.ne.s32.totalorder %s968_s0, %s809_s24  ;;  %p813_p1 = scmp.lt.u32.totalorder %s809_s24, %s968_s0 }
   0x7   :  { %p815_p2 = pnand %p813_p1, %p810_p0 }
   0x9   :  { %818 = shalt.err (!%p815_p2)
}
   0xa   :  { %s819_s29 = scalar_lea.vmem %s20_s19, 128  ;;  %p824_p4 = scmp.lt.s32.totalorder %s20_s19, %s20_s19 }
   0xb   :  { %p820_p3 = scmp.ne.s32.totalorder %s20_s19, %s819_s29  ;;  %p825_p5 = scmp.lt.s32.totalorder %s819_s29, %s819_s29 }
   0xd   :  { %p826_p6 = por %p825_p5, %p824_p4 }
   0xf   :  { %p827_p7 = pnand %p826_p6, %p820_p3 }
  0x11   :  { %830 = shalt.err (!%p827_p7)
}
  0x12   :  { %22 = dma.hbm_to_vmem [thread:$0]  %s968_s0, 128, %s20_s19, [#allocation3]  }
  0x13   :  { %s831_s9 = scalar_lea.hbm %s969_s1, 8192 }
  0x14   :  { %p832_p8 = scmp.ne.s32.totalorder %s969_s1, %s831_s9  ;;  %p835_p9 = scmp.lt.u32.totalorder %s831_s9, %s969_s1 }
  0x16   :  { %p837_p10 = pnand %p835_p9, %p832_p8 }
  0x18   :  { %840 = shalt.err (!%p837_p10)
}
  0x19   :  { %s841_s14 = scalar_lea.vmem %s916_s21, 8192  ;;  %p846_p12 = scmp.lt.s32.totalorder %s916_s21, %s916_s21 }
  0x1a   :  { %p842_p11 = scmp.ne.s32.totalorder %s916_s21, %s841_s14  ;;  %p847_p13 = scmp.lt.s32.totalorder %s841_s14, %s841_s14 }
  0x1c   :  { %p848_p0 = por %p847_p13, %p846_p12 }
  0x1e   :  { %p849_p1 = pnand %p848_p0, %p842_p11 }
  0x20   :  { %852 = shalt.err (!%p849_p1)
}
  0x21   :  { %s883_s0 = smov 256   ;;  %s884_s15 = smov 16  }
  0x22   :  { %34 = dma.hbm_to_vmem [thread:$0]  %s969_s1, 8192, %s916_s21, [#allocation6], %s883_s0, %s883_s0, %s884_s15  }
  0x23   :  { %875 = dma.done.wait [#allocation3], 128  }
  0x24   :  { %876 = vsyncadd [#allocation3], 4294967168 }
  0x25   :  { %877 = dma.done.wait [#allocation6], 8192  }
  0x26   :  { %878 = vsyncadd [#allocation6], 4294959104  ;;  %v703_v0 = vld [vmem:[#allocation5 + $0x4] ss:$16 sps:$4 sm:$0xff]   ;;  %v705_v1 = vld [vmem:[#allocation5 + $0xc] ss:$16 sps:$4 sm:$0xff]  }
  0x27   :  { %461 = vmatprep.subr.bf16.mxu0 %v703_v0  ;;  %v707_v2 = vld [vmem:[#allocation5] ss:$16 sps:$4 sm:$0xff]   ;;  %v708_v3 = vld [vmem:[#allocation5 + $0x8] ss:$16 sps:$4 sm:$0xff]   ;;  %502 = vmatprep.subr.bf16.mxu1 %v705_v1  ;;  %v709_v4 = vld [vmem:[#allocation5 + $0x24] ss:$16 sps:$4 sm:$0xff]  }
  0x28   :  { %462 = vmatpush1.bf16.msra.mxu0 %v707_v2  ;;  %503 = vmatpush1.bf16.msra.mxu1 %v708_v3  ;;  %v711_v5 = vld [vmem:[#allocation5 + $0x2c] ss:$16 sps:$4 sm:$0xff]   ;;  %v713_v6 = vld [vmem:[#allocation5 + $0x20] ss:$16 sps:$4 sm:$0xff]   ;;  %v714_v7 = vld [vmem:[#allocation5 + $0x28] ss:$16 sps:$4 sm:$0xff]   ;;  %v114_v3 = vlaneseq }
  0x29   :  { %463 = vmatprep.subr.bf16.mxu0 %v709_v4  ;;  %504 = vmatprep.subr.bf16.mxu1 %v711_v5  ;;  %v715_v8 = vld [vmem:[#allocation5 + $0x44] ss:$16 sps:$4 sm:$0xff]   ;;  %v717_v9 = vld [vmem:[#allocation5 + $0x4c] ss:$16 sps:$4 sm:$0xff]   ;;  %v719_v10 = vld [vmem:[#allocation5 + $0x40] ss:$16 sps:$4 sm:$0xff]  }
  0x2a   :  { %v720_v11 = vld [vmem:[#allocation5 + $0x48] ss:$16 sps:$4 sm:$0xff]   ;;  %v721_v12 = vld [vmem:[#allocation5 + $0x64] ss:$16 sps:$4 sm:$0xff]   ;;  %v723_v13 = vld [vmem:[#allocation5 + $0x6c] ss:$16 sps:$4 sm:$0xff]  }
  0x2b   :  { %v725_v14 = vld [vmem:[#allocation5 + $0x60] ss:$16 sps:$4 sm:$0xff]   ;;  %v726_v15 = vld [vmem:[#allocation5 + $0x68] ss:$16 sps:$4 sm:$0xff]   ;;  %v727_v16 = vld [vmem:[#allocation5 + $0x84] ss:$16 sps:$4 sm:$0xff]  }
  0x2c   :  { %464 = vmatpush1.bf16.msra.mxu0 %v713_v6  ;;  %505 = vmatpush1.bf16.msra.mxu1 %v714_v7  ;;  %v729_v17 = vld [vmem:[#allocation5 + $0x8c] ss:$16 sps:$4 sm:$0xff]   ;;  %v731_v18 = vld [vmem:[#allocation5 + $0x80] ss:$16 sps:$4 sm:$0xff]   ;;  %v732_v19 = vld [vmem:[#allocation5 + $0x88] ss:$16 sps:$4 sm:$0xff]  }
  0x2d   :  { %465 = vmatprep.subr.bf16.mxu0 %v715_v8  ;;  %506 = vmatprep.subr.bf16.mxu1 %v717_v9  ;;  %v733_v20 = vld [vmem:[#allocation5 + $0xa4] ss:$16 sps:$4 sm:$0xff]   ;;  %v735_v21 = vld [vmem:[#allocation5 + $0xac] ss:$16 sps:$4 sm:$0xff]   ;;  %v737_v22 = vld [vmem:[#allocation5 + $0xa0] ss:$16 sps:$4 sm:$0xff]  }
  0x2e   :  { %v738_v23 = vld [vmem:[#allocation5 + $0xa8] ss:$16 sps:$4 sm:$0xff]   ;;  %v739_v24 = vld [vmem:[#allocation5 + $0xc4] ss:$16 sps:$4 sm:$0xff]   ;;  %v741_v25 = vld [vmem:[#allocation5 + $0xcc] ss:$16 sps:$4 sm:$0xff]  }
  0x2f   :  { %v743_v26 = vld [vmem:[#allocation5 + $0xc0] ss:$16 sps:$4 sm:$0xff]   ;;  %v744_v27 = vld [vmem:[#allocation5 + $0xc8] ss:$16 sps:$4 sm:$0xff]   ;;  %v745_v28 = vld [vmem:[#allocation5 + $0xe4] ss:$16 sps:$4 sm:$0xff]  }
  0x30   :  { %466 = vmatpush1.bf16.msra.mxu0 %v719_v10  ;;  %507 = vmatpush1.bf16.msra.mxu1 %v720_v11  ;;  %v747_v29 = vld [vmem:[#allocation5 + $0xec] ss:$16 sps:$4 sm:$0xff]   ;;  %v749_v30 = vld [vmem:[#allocation5 + $0xe0] ss:$16 sps:$4 sm:$0xff]   ;;  %v750_v31 = vld [vmem:[#allocation5 + $0xe8] ss:$16 sps:$4 sm:$0xff]  }
  0x31   :  { %467 = vmatprep.subr.bf16.mxu0 %v721_v12  ;;  %508 = vmatprep.subr.bf16.mxu1 %v723_v13  ;;  %v751_v32 = vld [vmem:[#allocation5 + $0x104] ss:$16 sps:$4 sm:$0xff]   ;;  %v753_v33 = vld [vmem:[#allocation5 + $0x10c] ss:$16 sps:$4 sm:$0xff]   ;;  %v755_v34 = vld [vmem:[#allocation5 + $0x100] ss:$16 sps:$4 sm:$0xff]  }
  0x32   :  { %v756_v35 = vld [vmem:[#allocation5 + $0x108] ss:$16 sps:$4 sm:$0xff]   ;;  %v757_v36 = vld [vmem:[#allocation5 + $0x124] ss:$16 sps:$4 sm:$0xff]   ;;  %v759_v37 = vld [vmem:[#allocation5 + $0x12c] ss:$16 sps:$4 sm:$0xff]  }
  0x33   :  { %v761_v38 = vld [vmem:[#allocation5 + $0x120] ss:$16 sps:$4 sm:$0xff]   ;;  %v762_v39 = vld [vmem:[#allocation5 + $0x128] ss:$16 sps:$4 sm:$0xff]   ;;  %v763_v40 = vld [vmem:[#allocation5 + $0x144] ss:$16 sps:$4 sm:$0xff]  }
  0x34   :  { %468 = vmatpush1.bf16.msra.mxu0 %v725_v14  ;;  %509 = vmatpush1.bf16.msra.mxu1 %v726_v15  ;;  %v765_v41 = vld [vmem:[#allocation5 + $0x14c] ss:$16 sps:$4 sm:$0xff]   ;;  %v767_v42 = vld [vmem:[#allocation5 + $0x140] ss:$16 sps:$4 sm:$0xff]   ;;  %v768_v43 = vld [vmem:[#allocation5 + $0x148] ss:$16 sps:$4 sm:$0xff]  }
  0x35   :  { %469 = vmatprep.subr.bf16.mxu0 %v727_v16  ;;  %510 = vmatprep.subr.bf16.mxu1 %v729_v17  ;;  %v769_v44 = vld [vmem:[#allocation5 + $0x164] ss:$16 sps:$4 sm:$0xff]   ;;  %v771_v45 = vld [vmem:[#allocation5 + $0x16c] ss:$16 sps:$4 sm:$0xff]   ;;  %v773_v48 = vld [vmem:[#allocation5 + $0x160] ss:$16 sps:$4 sm:$0xff]  }
  0x36   :  { %v47_v46 = vld [vmem:[#allocation2] sm:$0xff]  ;;  %v775_v50 = vld [vmem:[#allocation5 + $0x184] ss:$16 sps:$4 sm:$0xff]   ;;  %v779_v52 = vld [vmem:[#allocation5 + $0x180] ss:$16 sps:$4 sm:$0xff]   ;;  %v115_v4 = vshrl.u32 %v114_v3, 7 }
  0x37   :  { %v631_v47 = vcombine.high %v47_v46, %v47_v46  ;;  %v774_v49 = vld [vmem:[#allocation5 + $0x168] ss:$16 sps:$4 sm:$0xff]   ;;  %v777_v51 = vld [vmem:[#allocation5 + $0x18c] ss:$16 sps:$4 sm:$0xff]   ;;  %v781_v54 = vld [vmem:[#allocation5 + $0x1a4] ss:$16 sps:$4 sm:$0xff]   ;;  %v630_v2 = vcombine.low %v47_v46, %v47_v46 }
  0x38   :  { %470 = vmatpush1.bf16.msra.mxu0 %v731_v18  ;;  %511 = vmatpush1.bf16.msra.mxu1 %v732_v19  ;;  %v780_v53 = vld [vmem:[#allocation5 + $0x188] ss:$16 sps:$4 sm:$0xff]   ;;  %v783_v55 = vld [vmem:[#allocation5 + $0x1ac] ss:$16 sps:$4 sm:$0xff]   ;;  %v785_v56 = vld [vmem:[#allocation5 + $0x1a0] ss:$16 sps:$4 sm:$0xff]  }
  0x39   :  { %471 = vmatprep.subr.bf16.mxu0 %v733_v20  ;;  %512 = vmatprep.subr.bf16.mxu1 %v735_v21  ;;  %v786_v57 = vld [vmem:[#allocation5 + $0x1a8] ss:$16 sps:$4 sm:$0xff]   ;;  %v787_v58 = vld [vmem:[#allocation5 + $0x1c4] ss:$16 sps:$4 sm:$0xff]   ;;  %v789_v59 = vld [vmem:[#allocation5 + $0x1cc] ss:$16 sps:$4 sm:$0xff]  }
  0x3a   :  { %493 = vmatprep.mubr.bf16.mxu0 %v631_v47  ;;  %534 = vmatprep.mubr.bf16.mxu1 %v631_v47  ;;  %v791_v60 = vld [vmem:[#allocation5 + $0x1c0] ss:$16 sps:$4 sm:$0xff]   ;;  %v792_v61 = vld [vmem:[#allocation5 + $0x1c8] ss:$16 sps:$4 sm:$0xff]   ;;  %v793_v62 = vld [vmem:[#allocation5 + $0x1e4] ss:$16 sps:$4 sm:$0xff]  }
  0x3b   :  { %v795_v63 = vld [vmem:[#allocation5 + $0x1ec] ss:$16 sps:$4 sm:$0xff]   ;;  %v797_v0 = vld [vmem:[#allocation5 + $0x1e0] ss:$16 sps:$4 sm:$0xff]   ;;  %v798_v1 = vld [vmem:[#allocation5 + $0x1e8] ss:$16 sps:$4 sm:$0xff]  }
  0x3c   :  { %472 = vmatpush1.bf16.msra.mxu0 %v737_v22  ;;  %513 = vmatpush1.bf16.msra.mxu1 %v738_v23  ;;  %v116_v5 = vsub.s32 0, %v115_v4  ;;  %v124_v6 = vsub.s32 2, %v115_v4  ;;  %v112_v7 = vld [vmem:[%s970_s2] sm:$0xf]  ;;  %v128_v8 = vsub.s32 3, %v115_v4  ;;  %v120_v11 = vsub.s32 1, %v115_v4 }
  0x3d   :  { %473 = vmatprep.subr.bf16.mxu0 %v739_v24  ;;  %514 = vmatprep.subr.bf16.mxu1 %v741_v25  ;;  %s885_s22 = smov [#allocation7]  }
  0x3e   :  { %v117_v9 = vrot.slane %v112_v7, %v116_v5  ;;  %v125_v10 = vrot.slane %v112_v7, %v124_v6  ;;  %v129_v12 = vrot.slane %v112_v7, %v128_v8  ;;  %v121_v17 = vrot.slane %v112_v7, %v120_v11 }
  0x40   :  { %474 = vmatpush1.bf16.msra.mxu0 %v743_v26  ;;  %515 = vmatpush1.bf16.msra.mxu1 %v744_v27 }
  0x41   :  { %475 = vmatprep.subr.bf16.mxu0 %v745_v28  ;;  %516 = vmatprep.subr.bf16.mxu1 %v747_v29 }
  0x44   :  { %476 = vmatpush1.bf16.msra.mxu0 %v749_v30  ;;  %517 = vmatpush1.bf16.msra.mxu1 %v750_v31 }
  0x45   :  { %477 = vmatprep.subr.bf16.mxu0 %v751_v32  ;;  %518 = vmatprep.subr.bf16.mxu1 %v753_v33 }
  0x48   :  { %478 = vmatpush1.bf16.msra.mxu0 %v755_v34  ;;  %519 = vmatpush1.bf16.msra.mxu1 %v756_v35 }
  0x49   :  { %479 = vmatprep.subr.bf16.mxu0 %v757_v36  ;;  %520 = vmatprep.subr.bf16.mxu1 %v759_v37 }
  0x4c   :  { %480 = vmatpush1.bf16.msra.mxu0 %v761_v38  ;;  %521 = vmatpush1.bf16.msra.mxu1 %v762_v39 }
  0x4d   :  { %481 = vmatprep.subr.bf16.mxu0 %v763_v40  ;;  %522 = vmatprep.subr.bf16.mxu1 %v765_v41 }
  0x50   :  { %482 = vmatpush1.bf16.msra.mxu0 %v767_v42  ;;  %523 = vmatpush1.bf16.msra.mxu1 %v768_v43 }
  0x51   :  { %483 = vmatprep.subr.bf16.mxu0 %v769_v44  ;;  %524 = vmatprep.subr.bf16.mxu1 %v771_v45 }
  0x54   :  { %484 = vmatpush1.bf16.msra.mxu0 %v773_v48  ;;  %525 = vmatpush1.bf16.msra.mxu1 %v774_v49 }
  0x55   :  { %485 = vmatprep.subr.bf16.mxu0 %v775_v50  ;;  %526 = vmatprep.subr.bf16.mxu1 %v777_v51 }
  0x58   :  { %486 = vmatpush1.bf16.msra.mxu0 %v779_v52  ;;  %527 = vmatpush1.bf16.msra.mxu1 %v780_v53 }
  0x59   :  { %487 = vmatprep.subr.bf16.mxu0 %v781_v54  ;;  %528 = vmatprep.subr.bf16.mxu1 %v783_v55  ;;  %v696_v55 = vld [vmem:[%s971_s3] ss:$0 sm:$0xff]  ;;  %s620_s3 = sshll.u32 %s885_s22, 4  ;;  %s621_s3 = int_to_ptr.vmem [resolvable:$true] %s620_s3 }
  0x5a   :  { %p858_p3 = scmp.lt.s32.totalorder %s621_s3, %s621_s3 }
  0x5c   :  { %488 = vmatpush1.bf16.msra.mxu0 %v785_v56  ;;  %529 = vmatpush1.bf16.msra.mxu1 %v786_v57  ;;  %v697_v57 = vld [vmem:[%s972_s4] ss:$0 sm:$0xff]  ;;  %s853_s4 = scalar_lea.vmem %s621_s3, 512 }
  0x5d   :  { %489 = vmatprep.subr.bf16.mxu0 %v787_v58  ;;  %530 = vmatprep.subr.bf16.mxu1 %v789_v59  ;;  %p854_p2 = scmp.ne.s32.totalorder %s621_s3, %s853_s4  ;;  %p859_p4 = scmp.lt.s32.totalorder %s853_s4, %s853_s4 }
  0x5f   :  { %p860_p5 = por %p859_p4, %p858_p3 }
  0x60   :  { %490 = vmatpush1.bf16.msra.mxu0 %v791_v60  ;;  %531 = vmatpush1.bf16.msra.mxu1 %v792_v61 }
  0x61   :  { %491 = vmatprep.subr.bf16.mxu0 %v793_v62  ;;  %532 = vmatprep.subr.bf16.mxu1 %v795_v63  ;;  %p861_p6 = pnand %p860_p5, %p854_p2 }
  0x64   :  { %492 = vmatpush1.bf16.msra.mxu0 %v797_v0  ;;  %533 = vmatpush1.bf16.msra.mxu1 %v798_v1 }
  0x67   :  { %494 = vmatmul.mubr.bf16.vlgmr.msra.gmra.mrb[0].mxu0 %v630_v2  ;;  %535 = vmatmul.mubr.bf16.vlgmr.msra.gmra.mrb[0].mxu1 %v630_v2 }
 0x13a   :  { %v495_v13 = vpop.f32.mrb[0].mxu0  ;;  %v536_v14 = vpop.f32.mrb[0].mxu1 }
 0x13b   :  { %v496_v15 = vadd.f32 %v495_v13, %v117_v9  ;;  %v537_v16 = vadd.f32 %v536_v14, %v125_v10  ;;  %v497_v18 = vpop.f32.mrb[1].mxu0  ;;  %v538_v19 = vpop.f32.mrb[1].mxu1 }
 0x13c   :  { %v499_v20 = vpop.f32.mrb[2].mxu0  ;;  %v540_v21 = vpop.f32.mrb[2].mxu1  ;;  %v539_v22 = vadd.f32 %v538_v19, %v129_v12  ;;  %v498_v25 = vadd.f32 %v497_v18, %v121_v17 }
 0x13d   :  { %586 = vadd.xlane.f32.xlu1 %v537_v16  ;;  %v500_v23 = vpop.f32.mrb[3].mxu0  ;;  %545 = vadd.xlane.f32.xlu0 %v496_v15  ;;  %v541_v24 = vpop.f32.mrb[3].mxu1 }
 0x141   :  { %600 = vadd.xlane.f32.xlu1 %v539_v22  ;;  %572 = vadd.xlane.f32.xlu0 %v498_v25 }
 0x1ca   :  { %v587_v26 = vpop.xlane.xlu1 %586  ;;  %v546_v27 = vpop.xlane.xlu0 %545 }
 0x1cb   :  { %v588_v28 = vmul.f32 0.0078125, %v587_v26  ;;  %v548_v29 = vmul.f32 0.0078125, %v546_v27 }
 0x1cd   :  { %v549_v30 = vsub.f32 %v496_v15, %v548_v29  ;;  %v589_v33 = vsub.f32 %v537_v16, %v588_v28 }
 0x1ce   :  { %v601_v31 = vpop.xlane.xlu1 %600  ;;  %v573_v32 = vpop.xlane.xlu0 %572 }
 0x1cf   :  { %v602_v34 = vmul.f32 0.0078125, %v601_v31  ;;  %v574_v35 = vmul.f32 0.0078125, %v573_v32  ;;  %v550_v36 = vmul.f32 %v549_v30, %v549_v30  ;;  %v590_v39 = vmul.f32 %v589_v33, %v589_v33 }
 0x1d1   :  { %v575_v37 = vsub.f32 %v498_v25, %v574_v35  ;;  %551 = vadd.xlane.f32.xlu0 %v550_v36  ;;  %v603_v38 = vsub.f32 %v539_v22, %v602_v34 }
 0x1d3   :  { %v576_v40 = vmul.f32 %v575_v37, %v575_v37  ;;  %v604_v41 = vmul.f32 %v603_v38, %v603_v38 }
 0x1d5   :  { %591 = vadd.xlane.f32.xlu0 %v590_v39  ;;  %577 = vadd.xlane.f32.xlu1 %v576_v40 }
 0x1d9   :  { %605 = vadd.xlane.f32.xlu1 %v604_v41 }
 0x25e   :  { %v552_v42 = vpop.xlane.xlu0 %551 }
 0x25f   :  { %v553_v43 = vmul.f32 0.0078125, %v552_v42 }
 0x261   :  { %v554_v44 = vadd.f32 1e-05, %v553_v43 }
 0x262   :  { %v578_v45 = vpop.xlane.xlu1 %577  ;;  %v592_v46 = vpop.xlane.xlu0 %591 }
 0x263   :  { %801 = vrsqrt.f32 %v554_v44  ;;  %v579_v47 = vmul.f32 0.0078125, %v578_v45  ;;  %v593_v48 = vmul.f32 0.0078125, %v592_v46 }
 0x265   :  { %v580_v49 = vadd.f32 1e-05, %v579_v47  ;;  %v594_v50 = vadd.f32 1e-05, %v593_v48 }
 0x266   :  { %v606_v51 = vpop.xlane.xlu1 %605 }
 0x267   :  { %803 = vrsqrt.f32 %v580_v49  ;;  %v607_v52 = vmul.f32 0.0078125, %v606_v51 }
 0x268   :  { %805 = vrsqrt.f32 %v594_v50 }
 0x269   :  { %v608_v53 = vadd.f32 1e-05, %v607_v52 }
 0x26b   :  { %807 = vrsqrt.f32 %v608_v53 }
 0x26d   :  { %v802_v54 = vpop.eup %801 }
 0x26e   :  { %v556_v56 = vmul.f32 %v802_v54, %v549_v30 }
 0x270   :  { %v563_v58 = vmul.f32 %v696_v55, %v556_v56 }
 0x271   :  { %v804_v59 = vpop.eup %803 }
 0x272   :  { %v806_v60 = vpop.eup %805  ;;  %v582_v61 = vmul.f32 %v804_v59, %v575_v37  ;;  %v570_v62 = vadd.f32 %v697_v57, %v563_v58 }
 0x273   :  { %v596_v63 = vmul.f32 %v806_v60, %v589_v33 }
 0x274   :  { %571 = vst [vmem:[#allocation7] sm:$0xff] %v570_v62  ;;  %v583_v0 = vmul.f32 %v696_v55, %v582_v61 }
 0x275   :  { %v808_v1 = vpop.eup %807  ;;  %v597_v2 = vmul.f32 %v696_v55, %v596_v63 }
 0x276   :  { %v610_v3 = vmul.f32 %v808_v1, %v603_v38  ;;  %v584_v4 = vadd.f32 %v697_v57, %v583_v0 }
 0x277   :  { %v598_v5 = vadd.f32 %v697_v57, %v597_v2 }
 0x278   :  { %585 = vst [vmem:[#allocation7 + $0x8] sm:$0xff] %v584_v4  ;;  %v611_v6 = vmul.f32 %v696_v55, %v610_v3 }
 0x279   :  { %599 = vst [vmem:[#allocation7 + $0x10] sm:$0xff] %v598_v5 }
 0x27a   :  { %v612_v7 = vadd.f32 %v697_v57, %v611_v6 }
 0x27c   :  { %613 = vst [vmem:[#allocation7 + $0x18] sm:$0xff] %v612_v7 }
 0x27d   :  { %864 = shalt.err (!%p861_p6)
}
 0x27e   :  { %s865_s25 = scalar_lea.hbm %s973_s5, 512 }
 0x27f   :  { %p866_p7 = scmp.ne.s32.totalorder %s973_s5, %s865_s25  ;;  %p869_p8 = scmp.lt.u32.totalorder %s865_s25, %s973_s5 }
 0x281   :  { %p871_p9 = pnand %p869_p8, %p866_p7 }
 0x283   :  { %874 = shalt.err (!%p871_p9)
}
 0x284   :  { %623 = dma.vmem_to_hbm [thread:$0]  %s621_s3, 512, %s973_s5, [#allocation4]  }
 0x285   :  { %879 = dma.done.wait [#allocation4], 512  }
 0x286   :  { %880 = vsyncadd [#allocation4], 4294966784 }
 0x287   :  { %627 = vsyncpa [#allocation3], 1 }
 0x288   :  { %628 = vsyncpa [#allocation6], 1 }
 0x289   :  { %629 = vsyncpa [#allocation4], 1 }

</bundles_post_ra>
